<compile_context>
chip_gen: v7x
topology: tpu7x:2x2x1
jax: 0.10.0
libtpu: 0.0.40
codegen_flags: <defaults>
</compile_context>

<pallas_src>
import functools
import math

import jax
import jax.numpy as jnp
from jax import lax
from jax.experimental import pallas as pl
from jax.experimental.pallas import tpu as pltpu


def _round_up(x, m):
    return (x + m - 1) // m * m


def _pad2(arr, rows, cols):
    r0, c0 = arr.shape
    if (r0, c0) == (rows, cols):
        return arr
    return jnp.pad(arr, ((0, rows - r0), (0, cols - c0)))


def _vmem_capacity_bytes():
    """Physical VMEM per TensorCore (used to size tiles / the scoped VMEM limit)."""
    try:
        info = pltpu.get_tpu_info()
        cap = getattr(info, "vmem_capacity_bytes", None)
        if cap:
            return int(cap)
    except Exception:
        pass
    return 64 << 20  # conservative (v7x-sized) fallback


def _sublane_grain(dtype):
    # f32 -> 8, bf16 -> 16, int8/fp8 -> 32 rows per packed vreg tile.
    return 8 * max(1, 4 // jnp.dtype(dtype).itemsize)


def _lora_linear_kernel(x_ref, w_ref, a_ref, b_ref, bias_ref, o_ref,
                        acc_ref, xa_ref, *, tk, compute_dtype):
    """One (i, j, k) grid step of the tiled LoRA linear.

    x_ref   : (tm, tk) or (tm, k_pad)        activations (full-K strip when it fits VMEM)
    w_ref   : (tn, tk)                       frozen weight tile, native (out, in) layout
    a_ref   : (r_pad, tk) or (r_pad, k_pad)  lora_A (rank zero-padded to a lane-dense 128)
    b_ref   : (tn, r_pad)                    scaling * lora_B tile
    bias_ref: (1, tn) f32                    bias tile
    acc_ref : (tm, tn) f32                   running  bias + x @ W^T  for this output tile
    xa_ref  : (tm, r_pad) f32                x @ A^T  (computed only on the j == 0 sweep)
    """
    j = pl.program_id(1)
    kk = pl.program_id(2)

    # Fold the bias into the accumulator init instead of the store epilogue.
    @pl.when(kk == 0)
    def _():
        acc_ref[...] = jnp.broadcast_to(bias_ref[...], acc_ref.shape)

    @pl.when(jnp.logical_and(j == 0, kk == 0))
    def _():
        xa_ref[...] = jnp.zeros_like(xa_ref)

    # x (and A) may be resident full-K strips; slice out the current K chunk.
    if x_ref.shape[1] == tk:
        x = x_ref[...]
    else:
        x = x_ref[:, pl.ds(pl.multiple_of(kk * tk, tk), tk)]
    x = x.astype(compute_dtype)

    # Base frozen linear: contract the K dims of x (tm, tk) and W (tn, tk) -> (tm, tn).
    acc_ref[...] += lax.dot_general(
        x, w_ref[...].astype(compute_dtype),
        dimension_numbers=(((1,), (1,)), ((), ())),
        preferred_element_type=jnp.float32)

    # LoRA down-projection x @ A^T is identical for every output-column tile, so do it
    # only on the j == 0 sweep; xa_ref persists in scratch for the remaining j's.
    @pl.when(j == 0)
    def _():
        if a_ref.shape[1] == tk:
            a = a_ref[...]
        else:
            a = a_ref[:, pl.ds(pl.multiple_of(kk * tk, tk), tk)]
        xa_ref[...] += lax.dot_general(
            x, a.astype(compute_dtype),
            dimension_numbers=(((1,), (1,)), ((), ())),
            preferred_element_type=jnp.float32)

    @pl.when(kk == pl.num_programs(2) - 1)
    def _():
        # LoRA up-projection (scaling already folded into B); tiny (tm,r) x (tn,r) matmul.
        lora = lax.dot_general(
            xa_ref[...].astype(compute_dtype), b_ref[...].astype(compute_dtype),
            dimension_numbers=(((1,), (1,)), ((), ())),
            preferred_element_type=jnp.float32)
        o_ref[...] = (acc_ref[...] + lora).astype(o_ref.dtype)


def make_lora_linear(weight, bias, lora_A, lora_B, scaling, *,
                     mxu_dtype=None, tm_max=None, tn_max=None, tk_max=None,
                     out_dtype=None):
    """Pad / cast the frozen + LoRA parameters ONCE and return forward(x) -> y.

    weight : (out_features, in_features)   frozen nn.Linear weight
    bias   : (out_features,) or None
    lora_A : (rank, in_features)
    lora_B : (out_features, rank)
    scaling: python float (alpha)
    mxu_dtype: optional dtype to feed the MXU (e.g. jnp.bfloat16 on v6e/v7x for f32
               callers); None keeps the parameters' own dtype (bit-exact f32 path).
    """
    n, k = weight.shape
    r = lora_A.shape[0]

    compute_dtype = (jnp.dtype(mxu_dtype) if mxu_dtype is not None
                     else jnp.dtype(weight.dtype))
    itemsize = compute_dtype.itemsize

    cap = _vmem_capacity_bytes()
    big_vmem = cap >= (96 << 20)          # v5e / v6e (128 MiB) vs v7x (64 MiB)

    # Tile defaults: sized so the kernel is MXU-bound at bf16, VMEM-safe on v7x,
    # larger on the 128 MiB parts.  Callers can override.
    if tn_max is None:
        tn_max = ((2048 if big_vmem else 1024) if itemsize <= 2
                  else (1024 if big_vmem else 512))
    if tk_max is None:
        tk_max = 1024 if itemsize <= 2 else 512
    if tm_max is None:
        tm_max = ((1024 if big_vmem else 512) if itemsize <= 2
                  else (512 if big_vmem else 256))

    tn = min(tn_max, _round_up(n, 128))
    tk = min(tk_max, _round_up(k, 128))
    r_pad = _round_up(max(r, 1), 128)          # lane-dense LoRA rank
    n_pad = _round_up(n, tn)
    k_pad = _round_up(k, tk)

    # Budget for keeping an array resident as a single full-K VMEM strip.
    strip_budget = (24 << 20) if big_vmem else (12 << 20)

    # --- Pad / cast the frozen parameters once (not per forward call). ---
    param_dtype = compute_dtype if mxu_dtype is not None else weight.dtype
    w2 = _pad2(weight.astype(param_dtype), n_pad, k_pad)
    a2 = _pad2(lora_A.astype(param_dtype), r_pad, k_pad)
    # Fold scaling into the (tiny) up-projection weight in f32; keep it f32 on the
    # exact path so the fold loses no precision.
    b_scaled = jnp.float32(scaling) * lora_B.astype(jnp.float32)
    b2 = _pad2(b_scaled.astype(param_dtype if mxu_dtype is not None else jnp.float32),
               n_pad, r_pad)
    if bias is None:
        bias2 = jnp.zeros((1, n_pad), jnp.float32)
    else:
        bias2 = _pad2(bias.astype(jnp.float32).reshape(1, n), 1, n_pad)

    a_strip = r_pad * k_pad * jnp.dtype(a2.dtype).itemsize <= strip_budget
    w_isz = jnp.dtype(w2.dtype).itemsize
    a_isz = jnp.dtype(a2.dtype).itemsize
    b_isz = jnp.dtype(b2.dtype).itemsize

    kernel = functools.partial(_lora_linear_kernel, tk=tk, compute_dtype=compute_dtype)

    def forward(x):
        bsz, seq, k_in = x.shape
        assert k_in == k, f"in_features mismatch: {k_in} vs {k}"
        m = bsz * seq
        in_isz = jnp.dtype(x.dtype).itemsize
        o_dtype = out_dtype or x.dtype

        grain = _sublane_grain(x.dtype)           # 8 (f32) / 16 (bf16) / 32 (int8)
        tm = min(tm_max, _round_up(m, grain))
        m_pad = _round_up(m, tm)

        x_strip = tm * k_pad * in_isz <= strip_budget
        x2 = _pad2(x.reshape(m, k), m_pad, k_pad)

        grid = (m_pad // tm, n_pad // tn, k_pad // tk)

        x_spec = (pl.BlockSpec((tm, k_pad), lambda i, j, kk: (i, 0)) if x_strip
                  else pl.BlockSpec((tm, tk), lambda i, j, kk: (i, kk)))
        a_spec = (pl.BlockSpec((r_pad, k_pad), lambda i, j, kk: (0, 0)) if a_strip
                  else pl.BlockSpec((r_pad, tk), lambda i, j, kk: (0, kk)))

        # VMEM: double-buffered blocks + f32 scratch accumulators + headroom.
        blk_bytes = (tm * (k_pad if x_strip else tk) * in_isz
                     + tn * tk * w_isz
                     + r_pad * (k_pad if a_strip else tk) * a_isz
                     + tn * r_pad * b_isz
                     + tn * 4
                     + tm * tn * jnp.dtype(o_dtype).itemsize)
        scratch_bytes = (tm * tn + tm * r_pad) * 4
        vmem_limit = int(min(max(2 * blk_bytes + scratch_bytes + (8 << 20), 32 << 20),
                             int(cap * 0.9)))

        cost = pl.CostEstimate(
            flops=(2 * m_pad * n_pad * k_pad            # base matmul
                   + 2 * m_pad * r_pad * k_pad          # LoRA down-proj (once per i)
                   + 2 * m_pad * n_pad * r_pad),        # LoRA up-proj epilogue
            transcendentals=0,
            bytes_accessed=int(
                m_pad * k_pad * in_isz                                # x: once per i (strip)
                + (m_pad // tm) * n_pad * k_pad * w_isz               # W re-streamed per i
                + r_pad * k_pad * a_isz                               # A: once
                + (m_pad // tm) * n_pad * r_pad * b_isz               # B per i
                + n_pad * 4                                           # bias
                + m_pad * n_pad * jnp.dtype(o_dtype).itemsize))       # output

        y = pl.pallas_call(
            kernel,
            out_shape=jax.ShapeDtypeStruct((m_pad, n_pad), o_dtype),
            grid_spec=pltpu.PrefetchScalarGridSpec(
                num_scalar_prefetch=0,
                grid=grid,
                in_specs=[
                    x_spec,                                              # x
                    pl.BlockSpec((tn, tk), lambda i, j, kk: (j, kk)),    # W (out, in)
                    a_spec,                                              # lora_A
                    pl.BlockSpec((tn, r_pad), lambda i, j, kk: (j, 0)),  # scaling * lora_B
                    pl.BlockSpec((1, tn), lambda i, j, kk: (0, j)),      # bias (f32)
                ],
                out_specs=pl.BlockSpec((tm, tn), lambda i, j, kk: (i, j)),
                scratch_shapes=[
                    pltpu.VMEM((tm, tn), jnp.float32),     # bias + x @ W^T accumulator
                    pltpu.VMEM((tm, r_pad), jnp.float32),  # x @ A^T (persists over the j sweep)
                ],
            ),
            compiler_params=pltpu.CompilerParams(
                # j must stay "arbitrary": xa_ref is only filled on the j == 0 sweep, so
                # the j axis may NOT be sharded across v7x's two TensorCores.  The i axis
                # stays "parallel" (each core owns its own scratch / i range).
                dimension_semantics=("parallel", "arbitrary", "arbitrary"),
                vmem_limit_bytes=vmem_limit),
            cost_estimate=cost,
        )(x2, w2, a2, b2, bias2)

        return y[:m, :n].reshape(bsz, seq, n)

    return forward


def lora_linear_forward(x, weight, bias, lora_A, lora_B, scaling, **kwargs):
    """One-shot convenience (re-pads parameters every call; prefer make_lora_linear)."""
    return make_lora_linear(weight, bias, lora_A, lora_B, scaling, **kwargs)(x)


if __name__ == "__main__":
    # Small shapes implied by the module's forward: (batch, seq, in_features).
    batch, seq, in_features, out_features, rank = 2, 8, 32, 32, 8
    alpha = 16.0
    scaling = alpha  # module sets self.scaling = alpha

    key = jax.random.PRNGKey(0)
    kx, kw, kb, ka, kb2 = jax.random.split(key, 5)

    # Deterministic parameter init mirroring the PyTorch __init__ bounds.
    bound = 1.0 / math.sqrt(in_features)
    weight = jax.random.uniform(kw, (out_features, in_features),
                                minval=-bound, maxval=bound, dtype=jnp.float32)
    bias = jax.random.uniform(kb, (out_features,),
                              minval=-bound, maxval=bound, dtype=jnp.float32)
    lora_A = jax.random.uniform(ka, (rank, in_features),
                                minval=-bound, maxval=bound, dtype=jnp.float32)
    # lora_B is zeros in the module; perturb so the LoRA path is numerically non-trivial.
    lora_B = 0.01 * jax.random.normal(kb2, (out_features, rank), dtype=jnp.float32)

    x = jax.random.normal(kx, (batch, seq, in_features), dtype=jnp.float32)

    # --- Exact (f32) path: strict check against the pure-JAX reference. ---
    fwd = make_lora_linear(weight, bias, lora_A, lora_B, scaling)
    y = jax.block_until_ready(fwd(x))

    x2 = x.reshape(batch * seq, in_features)
    ref = (x2 @ weight.T + bias) + scaling * ((x2 @ lora_A.T) @ lora_B.T)
    ref = ref.reshape(batch, seq, out_features)

    assert y.shape == (batch, seq, out_features)
    assert jnp.allclose(y, ref, atol=1e-5, rtol=1e-5), "f32 path mismatch vs reference"

    # --- bf16-MXU fast path (v6e / v7x recommendation): same semantics, looser tol. ---
    fwd_bf16 = make_lora_linear(weight, bias, lora_A, lora_B, scaling,
                                mxu_dtype=jnp.bfloat16)
    y_bf16 = jax.block_until_ready(fwd_bf16(x))
    assert jnp.allclose(y_bf16.astype(jnp.float32), ref, atol=5e-2, rtol=5e-2), \
        "bf16 MXU path mismatch vs reference"

    # --- Multi-tile path: small tile overrides force grid > 1 on every axis so the
    #     j==0 LoRA hoist, the resident full-K strip slicing and the accumulator
    #     init/finalize paths are all exercised. ---
    b2_, s2_, k2_, n2_, r2_ = 2, 16, 256, 192, 8
    t0, t1, t2, t3, t4 = jax.random.split(jax.random.PRNGKey(1), 5)
    bound2 = 1.0 / math.sqrt(k2_)
    w_t = jax.random.uniform(t0, (n2_, k2_), minval=-bound2, maxval=bound2,
                             dtype=jnp.float32)
    bias_t = jax.random.uniform(t1, (n2_,), minval=-bound2, maxval=bound2,
                                dtype=jnp.float32)
    a_t = jax.random.uniform(t2, (r2_, k2_), minval=-bound2, maxval=bound2,
                             dtype=jnp.float32)
    bB_t = 0.01 * jax.random.normal(t3, (n2_, r2_), dtype=jnp.float32)
    x_t = jax.random.normal(t4, (b2_, s2_, k2_), dtype=jnp.float32)

    fwd_t = make_lora_linear(w_t, bias_t, a_t, bB_t, scaling,
                             tm_max=16, tn_max=128, tk_max=128)
    y_t = jax.block_until_ready(fwd_t(x_t))
    xt2 = x_t.reshape(b2_ * s2_, k2_)
    ref_t = ((xt2 @ w_t.T + bias_t) + scaling * ((xt2 @ a_t.T) @ bB_t.T)
             ).reshape(b2_, s2_, n2_)
    assert jnp.allclose(y_t, ref_t, atol=1e-2, rtol=1e-2), "multi-tile path mismatch"

    print("KERNEL_OK")
</pallas_src>

<mosaic_0001>
module attributes {stable_mosaic.version = 11 : i64} {
  func.func @_lora_linear_kernel(%arg0: i32, %arg1: i32, %arg2: i32, %arg3: memref<16x128xf32, #tpu.memory_space<vmem>>, %arg4: memref<128x128xf32, #tpu.memory_space<vmem>>, %arg5: memref<128x128xf32, #tpu.memory_space<vmem>>, %arg6: memref<128x128xf32, #tpu.memory_space<vmem>>, %arg7: memref<1x128xf32, #tpu.memory_space<vmem>>, %arg8: memref<16x128xf32, #tpu.memory_space<vmem>>, %arg9: memref<16x128xf32, #tpu.memory_space<vmem>>, %arg10: memref<16x128xf32, #tpu.memory_space<vmem>>) attributes {dimension_semantics = [#tpu.dimension_semantics<parallel>, #tpu.dimension_semantics<arbitrary>, #tpu.dimension_semantics<arbitrary>], iteration_bounds = array<i64: 1, 1, 1>, scalar_prefetch = 0 : i64, scratch_operands = 2 : i64, tpu.core_type = #tpu.core_type<tc>, window_params = [{transform_indices = @transform_0, window_bounds = array<i64: 16, 128>}, {transform_indices = @transform_1, window_bounds = array<i64: 128, 128>}, {pipeline_mode = #tpu.pipeline_mode<synchronous>, transform_indices = @transform_2, window_bounds = array<i64: 128, 128>}, {transform_indices = @transform_3, window_bounds = array<i64: 128, 128>}, {transform_indices = @transform_4, window_bounds = array<i64: 1, 128>}, {transform_indices = @transform_5, window_bounds = array<i64: 16, 128>}]} {
    %c0_i32 = arith.constant 0 : i32
    %0 = arith.cmpi eq, %arg2, %c0_i32 : i32
    %1 = arith.extui %0 : i1 to i32
    %c0_i32_0 = arith.constant 0 : i32
    %2 = arith.cmpi ne, %1, %c0_i32_0 : i32
    scf.if %2 {
      %c0_15 = arith.constant 0 : index
      %c0_16 = arith.constant 0 : index
      %20 = vector.load %arg7[%c0_15, %c0_16] : memref<1x128xf32, #tpu.memory_space<vmem>>, vector<1x128xf32>
      %21 = vector.shape_cast %20 : vector<1x128xf32> to vector<1x128xf32>
      %22 = vector.broadcast %21 : vector<1x128xf32> to vector<16x128xf32>
      %c0_17 = arith.constant 0 : index
      %c0_18 = arith.constant 0 : index
      %23 = vector.load %arg9[%c0_17, %c0_18] : memref<16x128xf32, #tpu.memory_space<vmem>>, vector<16x128xf32>
      tpu.vector_store %arg9[%c0_17, %c0_18], %22 {strides = array<i32>} : memref<16x128xf32, #tpu.memory_space<vmem>>, vector<16x128xf32>,
    } else {
    }
    %c0_i32_1 = arith.constant 0 : i32
    %3 = arith.cmpi eq, %arg1, %c0_i32_1 : i32
    %c0_i32_2 = arith.constant 0 : i32
    %4 = arith.cmpi eq, %arg2, %c0_i32_2 : i32
    %5 = arith.andi %3, %4 : i1
    %6 = arith.extui %5 : i1 to i32
    %c0_i32_3 = arith.constant 0 : i32
    %7 = arith.cmpi ne, %6, %c0_i32_3 : i32
    scf.if %7 {
      %cst_15 = arith.constant 0.000000e+00 : f32
      %20 = vector.broadcast %cst_15 : f32 to vector<16x128xf32>
      %c0_16 = arith.constant 0 : index
      %c0_17 = arith.constant 0 : index
      %21 = vector.load %arg10[%c0_16, %c0_17] : memref<16x128xf32, #tpu.memory_space<vmem>>, vector<16x128xf32>
      tpu.vector_store %arg10[%c0_16, %c0_17], %20 {strides = array<i32>} : memref<16x128xf32, #tpu.memory_space<vmem>>, vector<16x128xf32>,
    } else {
    }
    %c0 = arith.constant 0 : index
    %c0_4 = arith.constant 0 : index
    %8 = vector.load %arg3[%c0, %c0_4] : memref<16x128xf32, #tpu.memory_space<vmem>>, vector<16x128xf32>
    %c0_5 = arith.constant 0 : index
    %c0_6 = arith.constant 0 : index
    %9 = vector.load %arg9[%c0_5, %c0_6] : memref<16x128xf32, #tpu.memory_space<vmem>>, vector<16x128xf32>
    %c0_7 = arith.constant 0 : index
    %c0_8 = arith.constant 0 : index
    %10 = vector.load %arg4[%c0_7, %c0_8] : memref<128x128xf32, #tpu.memory_space<vmem>>, vector<128x128xf32>
    %cst = arith.constant dense<0.000000e+00> : vector<16x128xf32>
    %11 = tpu.matmul %8, %10, %cst {dimension_numbers = #tpu.dot_dimension_numbers<[1], [1], [0], [0], [0, 0, 1, 0], [], []>} : vector<16x128xf32>, vector<128x128xf32>, vector<16x128xf32> -> vector<16x128xf32>
    %12 = arith.addf %9, %11 : vector<16x128xf32>
    %c0_9 = arith.constant 0 : index
    %c0_10 = arith.constant 0 : index
    %13 = vector.load %arg9[%c0_9, %c0_10] : memref<16x128xf32, #tpu.memory_space<vmem>>, vector<16x128xf32>
    tpu.vector_store %arg9[%c0_9, %c0_10], %12 {strides = array<i32>} : memref<16x128xf32, #tpu.memory_space<vmem>>, vector<16x128xf32>,
    %c0_i32_11 = arith.constant 0 : i32
    %14 = arith.cmpi eq, %arg1, %c0_i32_11 : i32
    %15 = arith.extui %14 : i1 to i32
    %c0_i32_12 = arith.constant 0 : i32
    %16 = arith.cmpi ne, %15, %c0_i32_12 : i32
    scf.if %16 {
      %c0_15 = arith.constant 0 : index
      %c0_16 = arith.constant 0 : index
      %20 = vector.load %arg5[%c0_15, %c0_16] : memref<128x128xf32, #tpu.memory_space<vmem>>, vector<128x128xf32>
      %c0_17 = arith.constant 0 : index
      %c0_18 = arith.constant 0 : index
      %21 = vector.load %arg10[%c0_17, %c0_18] : memref<16x128xf32, #tpu.memory_space<vmem>>, vector<16x128xf32>
      %cst_19 = arith.constant dense<0.000000e+00> : vector<16x128xf32>
      %22 = tpu.matmul %8, %20, %cst_19 {dimension_numbers = #tpu.dot_dimension_numbers<[1], [1], [0], [0], [0, 0, 1, 0], [], []>} : vector<16x128xf32>, vector<128x128xf32>, vector<16x128xf32> -> vector<16x128xf32>
      %23 = arith.addf %21, %22 : vector<16x128xf32>
      %c0_20 = arith.constant 0 : index
      %c0_21 = arith.constant 0 : index
      %24 = vector.load %arg10[%c0_20, %c0_21] : memref<16x128xf32, #tpu.memory_space<vmem>>, vector<16x128xf32>
      tpu.vector_store %arg10[%c0_20, %c0_21], %23 {strides = array<i32>} : memref<16x128xf32, #tpu.memory_space<vmem>>, vector<16x128xf32>,
    } else {
    }
    %c0_i32_13 = arith.constant 0 : i32
    %17 = arith.cmpi eq, %arg2, %c0_i32_13 : i32
    %18 = arith.extui %17 : i1 to i32
    %c0_i32_14 = arith.constant 0 : i32
    %19 = arith.cmpi ne, %18, %c0_i32_14 : i32
    scf.if %19 {
      %c0_15 = arith.constant 0 : index
      %c0_16 = arith.constant 0 : index
      %20 = vector.load %arg10[%c0_15, %c0_16] : memref<16x128xf32, #tpu.memory_space<vmem>>, vector<16x128xf32>
      %c0_17 = arith.constant 0 : index
      %c0_18 = arith.constant 0 : index
      %21 = vector.load %arg6[%c0_17, %c0_18] : memref<128x128xf32, #tpu.memory_space<vmem>>, vector<128x128xf32>
      %cst_19 = arith.constant dense<0.000000e+00> : vector<16x128xf32>
      %22 = tpu.matmul %20, %21, %cst_19 {dimension_numbers = #tpu.dot_dimension_numbers<[1], [1], [0], [0], [0, 0, 1, 0], [], []>} : vector<16x128xf32>, vector<128x128xf32>, vector<16x128xf32> -> vector<16x128xf32>
      %c0_20 = arith.constant 0 : index
      %c0_21 = arith.constant 0 : index
      %23 = vector.load %arg9[%c0_20, %c0_21] : memref<16x128xf32, #tpu.memory_space<vmem>>, vector<16x128xf32>
      %24 = arith.addf %23, %22 : vector<16x128xf32>
      %c0_22 = arith.constant 0 : index
      %c0_23 = arith.constant 0 : index
      %25 = vector.load %arg8[%c0_22, %c0_23] : memref<16x128xf32, #tpu.memory_space<vmem>>, vector<16x128xf32>
      tpu.vector_store %arg8[%c0_22, %c0_23], %24 {strides = array<i32>} : memref<16x128xf32, #tpu.memory_space<vmem>>, vector<16x128xf32>,
    } else {
    }
    return
  }
  func.func @transform_0(%arg0: i32, %arg1: i32, %arg2: i32) -> (i32, i32) {
    %c0_i32 = arith.constant 0 : i32
    %c0_i32_0 = arith.constant 0 : i32
    return %arg0, %c0_i32 : i32, i32
  }
  func.func @transform_1(%arg0: i32, %arg1: i32, %arg2: i32) -> (i32, i32) {
    %c0_i32 = arith.constant 0 : i32
    return %arg1, %arg2 : i32, i32
  }
  func.func @transform_2(%arg0: i32, %arg1: i32, %arg2: i32) -> (i32, i32) {
    %c0_i32 = arith.constant 0 : i32
    %c0_i32_0 = arith.constant 0 : i32
    %c0_i32_1 = arith.constant 0 : i32
    return %c0_i32, %c0_i32_0 : i32, i32
  }
  func.func @transform_3(%arg0: i32, %arg1: i32, %arg2: i32) -> (i32, i32) {
    %c0_i32 = arith.constant 0 : i32
    %c0_i32_0 = arith.constant 0 : i32
    return %arg1, %c0_i32 : i32, i32
  }
  func.func @transform_4(%arg0: i32, %arg1: i32, %arg2: i32) -> (i32, i32) {
    %c0_i32 = arith.constant 0 : i32
    %c0_i32_0 = arith.constant 0 : i32
    return %c0_i32, %arg1 : i32, i32
  }
  func.func @transform_5(%arg0: i32, %arg1: i32, %arg2: i32) -> (i32, i32) {
    %c0_i32 = arith.constant 0 : i32
    return %arg0, %arg1 : i32, i32
  }
}

</mosaic_0001>

<bundles_post_ra>
// kernel: tpu_custom_call.1
= control target key start
LH: loop header
LB: loop body
LE: loop exit
PB: predicated region body
PF: predicated region fallthrough
CT: control target
= control target key end

     0   :  { %10 = vsyncpa [#allocation5], 0  ;;  %s930_s0 = inlined_call_operand.hbm [shape: f32[16,128], index: 0, kind: input, shape index: {}]   ;;  %s931_s1 = inlined_call_operand.hbm [shape: f32[128,128], index: 1, kind: input, shape index: {}]   ;;  %s932_s2 = inlined_call_operand.hbm [shape: f32[128,128], index: 2, kind: input, shape index: {}]   ;;  %s933_s3 = inlined_call_operand.hbm [shape: f32[128,128], index: 3, kind: input, shape index: {}]   ;;  %s934_s4 = inlined_call_operand.vmem [shape: f32[1,128], index: 4, kind: input, shape index: {}]   ;;  %s935_s5 = inlined_call_operand.hbm [shape: f32[16,128], index: 5, kind: output, shape index: {}]  }
   0x1   :  { %11 = vsyncpa [#allocation8], 0 }
   0x2   :  { %12 = vsyncpa [#allocation11], 0 }
   0x3   :  { %13 = vsyncpa [#allocation6], 0  ;;  %s801_s18 = smov [#allocation7]   ;;  %s802_s20 = smov [#allocation4]  }
   0x4   :  { %s31_s19 = sshll.u32 %s801_s18, 4  ;;  %s19_s21 = sshll.u32 %s802_s20, 4  ;;  %s32_s19 = int_to_ptr.vmem [resolvable:$true] %s31_s19  ;;  %s838_s21 = int_to_ptr.vmem [resolvable:$true] %s19_s21 }
   0x5   :  { %s683_s24 = scalar_lea.hbm %s931_s1, 2048 }
   0x6   :  { %p684_p0 = scmp.ne.s32.totalorder %s931_s1, %s683_s24  ;;  %p687_p1 = scmp.lt.u32.totalorder %s683_s24, %s931_s1 }
   0x8   :  { %p689_p2 = pnand %p687_p1, %p684_p0 }
   0xa   :  { %692 = shalt.err (!%p689_p2)
}
   0xb   :  { %s693_s29 = scalar_lea.vmem %s32_s19, 2048  ;;  %p698_p4 = scmp.lt.s32.totalorder %s32_s19, %s32_s19 }
   0xc   :  { %p694_p3 = scmp.ne.s32.totalorder %s32_s19, %s693_s29  ;;  %p699_p5 = scmp.lt.s32.totalorder %s693_s29, %s693_s29 }
   0xe   :  { %p700_p6 = por %p699_p5, %p698_p4 }
  0x10   :  { %p701_p7 = pnand %p700_p6, %p694_p3 }
  0x12   :  { %704 = shalt.err (!%p701_p7)
}
  0x13   :  { %s803_s30 = smov 128   ;;  %s804_s6 = smov 8  }
  0x14   :  { %37 = dma.hbm_to_vmem [thread:$0]  %s931_s1, 2048, %s32_s19, [#allocation8], %s803_s30, %s803_s30, %s804_s6  }
  0x15   :  { %s705_s11 = scalar_lea.hbm %s930_s0, 256 }
  0x16   :  { %p706_p8 = scmp.ne.s32.totalorder %s930_s0, %s705_s11  ;;  %p709_p9 = scmp.lt.u32.totalorder %s705_s11, %s930_s0 }
  0x18   :  { %p711_p10 = pnand %p709_p9, %p706_p8 }
  0x1a   :  { %714 = shalt.err (!%p711_p10)
}
  0x1b   :  { %s715_s16 = scalar_lea.vmem %s838_s21, 256  ;;  %p720_p12 = scmp.lt.s32.totalorder %s838_s21, %s838_s21 }
  0x1c   :  { %p716_p11 = scmp.ne.s32.totalorder %s838_s21, %s715_s16  ;;  %p721_p13 = scmp.lt.s32.totalorder %s715_s16, %s715_s16 }
  0x1e   :  { %p722_p0 = por %p721_p13, %p720_p12 }
  0x20   :  { %p723_p1 = pnand %p722_p0, %p716_p11 }
  0x22   :  { %726 = shalt.err (!%p723_p1)
}
  0x23   :  { %25 = dma.hbm_to_vmem [thread:$0]  %s930_s0, 256, %s838_s21, [#allocation5], %s803_s30, %s803_s30, %s804_s6  }
  0x24   :  { %s805_s18 = smov [#allocation9]   ;;  %s806_s20 = smov [#allocation10]  }
  0x25   :  { %s43_s19 = sshll.u32 %s805_s18, 4  ;;  %s55_s22 = sshll.u32 %s806_s20, 4  ;;  %s44_s19 = int_to_ptr.vmem [resolvable:$true] %s43_s19  ;;  %s875_s22 = int_to_ptr.vmem [resolvable:$true] %s55_s22 }
  0x26   :  { %s727_s25 = scalar_lea.hbm %s932_s2, 2048 }
  0x27   :  { %p728_p2 = scmp.ne.s32.totalorder %s932_s2, %s727_s25  ;;  %p731_p3 = scmp.lt.u32.totalorder %s727_s25, %s932_s2 }
  0x29   :  { %p733_p4 = pnand %p731_p3, %p728_p2 }
  0x2b   :  { %736 = shalt.err (!%p733_p4)
}
  0x2c   :  { %s737_s0 = scalar_lea.vmem %s44_s19, 2048  ;;  %p742_p6 = scmp.lt.s32.totalorder %s44_s19, %s44_s19 }
  0x2d   :  { %p738_p5 = scmp.ne.s32.totalorder %s44_s19, %s737_s0  ;;  %p743_p7 = scmp.lt.s32.totalorder %s737_s0, %s737_s0 }
  0x2f   :  { %p744_p8 = por %p743_p7, %p742_p6 }
  0x31   :  { %p745_p9 = pnand %p744_p8, %p738_p5 }
  0x33   :  { %748 = shalt.err (!%p745_p9)
}
  0x34   :  { %49 = dma.hbm_to_vmem [thread:$0]  %s932_s2, 2048, %s44_s19, [#allocation8], %s803_s30, %s803_s30, %s804_s6  }
  0x35   :  { %s749_s10 = scalar_lea.hbm %s933_s3, 2048 }
  0x36   :  { %p750_p10 = scmp.ne.s32.totalorder %s933_s3, %s749_s10  ;;  %p753_p11 = scmp.lt.u32.totalorder %s749_s10, %s933_s3 }
  0x38   :  { %p755_p12 = pnand %p753_p11, %p750_p10 }
  0x3a   :  { %758 = shalt.err (!%p755_p12)
}
  0x3b   :  { %s759_s15 = scalar_lea.vmem %s875_s22, 2048  ;;  %p764_p0 = scmp.lt.s32.totalorder %s875_s22, %s875_s22 }
  0x3c   :  { %p760_p13 = scmp.ne.s32.totalorder %s875_s22, %s759_s15  ;;  %p765_p1 = scmp.lt.s32.totalorder %s759_s15, %s759_s15 }
  0x3e   :  { %p766_p2 = por %p765_p1, %p764_p0 }
  0x40   :  { %p767_p3 = pnand %p766_p2, %p760_p13 }
  0x42   :  { %770 = shalt.err (!%p767_p3)
}
  0x43   :  { %61 = dma.hbm_to_vmem [thread:$0]  %s933_s3, 2048, %s875_s22, [#allocation11], %s803_s30, %s803_s30, %s804_s6  }
  0x44   :  { %793 = dma.done.wait [#allocation5], 256  }
  0x45   :  { %794 = vsyncadd [#allocation5], 4294967040 }
  0x46   :  { %795 = dma.done.wait [#allocation8], 4096  }
  0x47   :  { %796 = vsyncadd [#allocation8], 4294963200 }
  0x48   :  { %797 = dma.done.wait [#allocation11], 2048  }
  0x49   :  { %798 = vsyncadd [#allocation11], 4294965248  ;;  %v198_v0 = vld [vmem:[#allocation9] sm:$0xff]  ;;  %v199_v1 = vld [vmem:[#allocation9 + $0x8] sm:$0xff]  ;;  %s807_s17 = smov [#allocation12]  }
  0x4a   :  { %v200_v2 = vld [vmem:[#allocation9 + $0x10] sm:$0xff]  ;;  %v608_v3 = vpack.c.bf16 %v199_v1, %v198_v0  ;;  %v201_v4 = vld [vmem:[#allocation9 + $0x18] sm:$0xff]  ;;  %v202_v6 = vld [vmem:[#allocation9 + $0x20] sm:$0xff]  ;;  %s402_s18 = sshll.u32 %s807_s17, 4  ;;  %s403_s18 = int_to_ptr.vmem [resolvable:$true] %s402_s18 }
  0x4b   :  { %v612_v5 = vpack.c.bf16 %v201_v4, %v200_v2  ;;  %v203_v7 = vld [vmem:[#allocation9 + $0x28] sm:$0xff]  ;;  %v96_v8 = vld [vmem:[#allocation4] sm:$0xff]  ;;  %v100_v9 = vld [vmem:[#allocation7] sm:$0xff]  ;;  %s771_s19 = scalar_lea.vmem %s403_s18, 256  ;;  %p776_p5 = scmp.lt.s32.totalorder %s403_s18, %s403_s18 }
  0x4c   :  { %609 = vmatprep.subr.bf16.mxu1 %v608_v3  ;;  %538 = vmatprep.mubr.f32.mxu1 %v96_v8  ;;  %v101_v10 = vld [vmem:[#allocation7 + $0x8] sm:$0xff]  ;;  %v102_v11 = vld [vmem:[#allocation7 + $0x10] sm:$0xff]  ;;  %v103_v13 = vld [vmem:[#allocation7 + $0x18] sm:$0xff]  ;;  %v616_v15 = vpack.c.bf16 %v203_v7, %v202_v6  ;;  %p772_p4 = scmp.ne.s32.totalorder %s403_s18, %s771_s19  ;;  %p777_p6 = scmp.lt.s32.totalorder %s771_s19, %s771_s19 }
  0x4d   :  { %611 = vmatpush3.bf16.xpose.msra.mxu1 %v608_v3  ;;  %503 = vmatprep.mubr.f32.mxu0 %v96_v8  ;;  %v576_v12 = vpack.c.bf16 %v101_v10, %v100_v9  ;;  %v580_v14 = vpack.c.bf16 %v103_v13, %v102_v11  ;;  %v104_v16 = vld [vmem:[#allocation7 + $0x20] sm:$0xff]  ;;  %v105_v17 = vld [vmem:[#allocation7 + $0x28] sm:$0xff]  ;;  %v204_v18 = vld [vmem:[#allocation9 + $0x30] sm:$0xff] }
  0x4e   :  { %613 = vmatprep.subr.bf16.mxu1 %v612_v5  ;;  %v205_v19 = vld [vmem:[#allocation9 + $0x38] sm:$0xff]  ;;  %v584_v20 = vpack.c.bf16 %v105_v17, %v104_v16  ;;  %v106_v22 = vld [vmem:[#allocation7 + $0x30] sm:$0xff]  ;;  %v206_v24 = vld [vmem:[#allocation9 + $0x40] sm:$0xff]  ;;  %p778_p7 = por %p777_p6, %p776_p5 }
  0x4f   :  { %577 = vmatprep.subr.bf16.mxu0 %v576_v12  ;;  %v620_v21 = vpack.c.bf16 %v205_v19, %v204_v18  ;;  %v107_v23 = vld [vmem:[#allocation7 + $0x38] sm:$0xff]  ;;  %v207_v25 = vld [vmem:[#allocation9 + $0x48] sm:$0xff]  ;;  %v108_v28 = vld [vmem:[#allocation7 + $0x40] sm:$0xff] }
  0x50   :  { %579 = vmatpush3.bf16.xpose.msra.mxu0 %v576_v12  ;;  %v588_v26 = vpack.c.bf16 %v107_v23, %v106_v22  ;;  %v624_v27 = vpack.c.bf16 %v207_v25, %v206_v24  ;;  %v109_v29 = vld [vmem:[#allocation7 + $0x48] sm:$0xff]  ;;  %v208_v30 = vld [vmem:[#allocation9 + $0x50] sm:$0xff]  ;;  %v209_v31 = vld [vmem:[#allocation9 + $0x58] sm:$0xff]  ;;  %p779_p8 = pnand %p778_p7, %p772_p4 }
  0x51   :  { %581 = vmatprep.subr.bf16.mxu0 %v580_v14  ;;  %v592_v32 = vpack.c.bf16 %v109_v29, %v108_v28  ;;  %v628_v33 = vpack.c.bf16 %v209_v31, %v208_v30  ;;  %v110_v34 = vld [vmem:[#allocation7 + $0x50] sm:$0xff]  ;;  %v111_v35 = vld [vmem:[#allocation7 + $0x58] sm:$0xff]  ;;  %v210_v36 = vld [vmem:[#allocation9 + $0x60] sm:$0xff] }
  0x52   :  { %v211_v37 = vld [vmem:[#allocation9 + $0x68] sm:$0xff]  ;;  %v596_v38 = vpack.c.bf16 %v111_v35, %v110_v34  ;;  %v112_v40 = vld [vmem:[#allocation7 + $0x60] sm:$0xff]  ;;  %v212_v42 = vld [vmem:[#allocation9 + $0x70] sm:$0xff] }
  0x53   :  { %v632_v39 = vpack.c.bf16 %v211_v37, %v210_v36  ;;  %v113_v41 = vld [vmem:[#allocation7 + $0x68] sm:$0xff]  ;;  %v213_v43 = vld [vmem:[#allocation9 + $0x78] sm:$0xff]  ;;  %v114_v46 = vld [vmem:[#allocation7 + $0x70] sm:$0xff] }
  0x54   :  { %v600_v44 = vpack.c.bf16 %v113_v41, %v112_v40  ;;  %v636_v45 = vpack.c.bf16 %v213_v43, %v212_v42  ;;  %v115_v47 = vld [vmem:[#allocation7 + $0x78] sm:$0xff]  ;;  %v300_v49 = vld [vmem:[#allocation10] sm:$0xff]  ;;  %v301_v50 = vld [vmem:[#allocation10 + $0x8] sm:$0xff] }
  0x55   :  { %615 = vmatpush3.bf16.xpose.msra.mxu1 %v612_v5  ;;  %v604_v48 = vpack.c.bf16 %v115_v47, %v114_v46  ;;  %v640_v51 = vpack.c.bf16 %v301_v50, %v300_v49  ;;  %v97_v52 = vld [vmem:[#allocation4 + $0x8] sm:$0xff]  ;;  %v302_v53 = vld [vmem:[#allocation10 + $0x10] sm:$0xff]  ;;  %v304_v56 = vld [vmem:[#allocation10 + $0x20] sm:$0xff] }
  0x56   :  { %617 = vmatprep.subr.bf16.mxu1 %v616_v15  ;;  %v303_v54 = vld [vmem:[#allocation10 + $0x18] sm:$0xff]  ;;  %v305_v57 = vld [vmem:[#allocation10 + $0x28] sm:$0xff]  ;;  %v306_v59 = vld [vmem:[#allocation10 + $0x30] sm:$0xff] }
  0x57   :  { %v644_v55 = vpack.c.bf16 %v303_v54, %v302_v53  ;;  %v648_v58 = vpack.c.bf16 %v305_v57, %v304_v56  ;;  %v307_v60 = vld [vmem:[#allocation10 + $0x38] sm:$0xff]  ;;  %v308_v62 = vld [vmem:[#allocation10 + $0x40] sm:$0xff]  ;;  %v309_v63 = vld [vmem:[#allocation10 + $0x48] sm:$0xff] }
  0x58   :  { %583 = vmatpush3.bf16.xpose.msra.mxu0 %v580_v14  ;;  %v652_v61 = vpack.c.bf16 %v307_v60, %v306_v59  ;;  %v656_v0 = vpack.c.bf16 %v309_v63, %v308_v62  ;;  %v310_v1 = vld [vmem:[#allocation10 + $0x50] sm:$0xff]  ;;  %v311_v2 = vld [vmem:[#allocation10 + $0x58] sm:$0xff]  ;;  %v312_v4 = vld [vmem:[#allocation10 + $0x60] sm:$0xff] }
  0x59   :  { %585 = vmatprep.subr.bf16.mxu0 %v584_v20  ;;  %v660_v3 = vpack.c.bf16 %v311_v2, %v310_v1  ;;  %v313_v5 = vld [vmem:[#allocation10 + $0x68] sm:$0xff]  ;;  %v314_v7 = vld [vmem:[#allocation10 + $0x70] sm:$0xff]  ;;  %v315_v8 = vld [vmem:[#allocation10 + $0x78] sm:$0xff] }
  0x5a   :  { %v664_v6 = vpack.c.bf16 %v313_v5, %v312_v4  ;;  %v668_v9 = vpack.c.bf16 %v315_v8, %v314_v7  ;;  %v416_v12 = vld [vmem:[%s934_s4] ss:$0 sm:$0xff] }
  0x5d   :  { %619 = vmatpush3.bf16.xpose.msra.mxu1 %v616_v15 }
  0x5e   :  { %621 = vmatprep.subr.bf16.mxu1 %v620_v21 }
  0x60   :  { %587 = vmatpush3.bf16.xpose.msra.mxu0 %v584_v20 }
  0x61   :  { %589 = vmatprep.subr.bf16.mxu0 %v588_v26 }
  0x65   :  { %623 = vmatpush3.bf16.xpose.msra.mxu1 %v620_v21 }
  0x66   :  { %625 = vmatprep.subr.bf16.mxu1 %v624_v27 }
  0x68   :  { %591 = vmatpush3.bf16.xpose.msra.mxu0 %v588_v26 }
  0x69   :  { %593 = vmatprep.subr.bf16.mxu0 %v592_v32 }
  0x6d   :  { %627 = vmatpush3.bf16.xpose.msra.mxu1 %v624_v27 }
  0x6e   :  { %629 = vmatprep.subr.bf16.mxu1 %v628_v33 }
  0x70   :  { %595 = vmatpush3.bf16.xpose.msra.mxu0 %v592_v32 }
  0x71   :  { %597 = vmatprep.subr.bf16.mxu0 %v596_v38 }
  0x75   :  { %631 = vmatpush3.bf16.xpose.msra.mxu1 %v628_v33 }
  0x76   :  { %633 = vmatprep.subr.bf16.mxu1 %v632_v39 }
  0x78   :  { %599 = vmatpush3.bf16.xpose.msra.mxu0 %v596_v38 }
  0x79   :  { %601 = vmatprep.subr.bf16.mxu0 %v600_v44 }
  0x7d   :  { %635 = vmatpush3.bf16.xpose.msra.mxu1 %v632_v39 }
  0x7e   :  { %637 = vmatprep.subr.bf16.mxu1 %v636_v45 }
  0x80   :  { %603 = vmatpush3.bf16.xpose.msra.mxu0 %v600_v44 }
  0x81   :  { %605 = vmatprep.subr.bf16.mxu0 %v604_v48 }
  0x85   :  { %639 = vmatpush3.bf16.xpose.msra.mxu1 %v636_v45 }
  0x88   :  { %607 = vmatpush3.bf16.xpose.msra.mxu0 %v604_v48 }
  0x89   :  { %641 = vmatprep.subr.bf16.mxu0 %v640_v51 }
  0x8c   :  { %539 = vmatmul.mubr.f32.vlgmr.msra.gmra.mrb[0].mxu1 %v97_v52 }
  0x8f   :  { %504 = vmatmul.mubr.f32.vlgmr.msra.gmra.mrb[0].mxu0 %v97_v52 }
  0x90   :  { %643 = vmatpush3.bf16.xpose.msra.mxu0 %v640_v51 }
  0x91   :  { %645 = vmatprep.subr.bf16.mxu0 %v644_v55 }
  0x98   :  { %647 = vmatpush3.bf16.xpose.msra.mxu0 %v644_v55 }
  0x99   :  { %649 = vmatprep.subr.bf16.mxu0 %v648_v58 }
  0xa0   :  { %651 = vmatpush3.bf16.xpose.msra.mxu0 %v648_v58 }
  0xa1   :  { %653 = vmatprep.subr.bf16.mxu0 %v652_v61 }
  0xa8   :  { %655 = vmatpush3.bf16.xpose.msra.mxu0 %v652_v61 }
  0xa9   :  { %657 = vmatprep.subr.bf16.mxu0 %v656_v0 }
  0xb0   :  { %659 = vmatpush3.bf16.xpose.msra.mxu0 %v656_v0 }
  0xb1   :  { %661 = vmatprep.subr.bf16.mxu0 %v660_v3 }
  0xb8   :  { %663 = vmatpush3.bf16.xpose.msra.mxu0 %v660_v3 }
  0xb9   :  { %665 = vmatprep.subr.bf16.mxu0 %v664_v6 }
  0xc0   :  { %667 = vmatpush3.bf16.xpose.msra.mxu0 %v664_v6 }
  0xc1   :  { %669 = vmatprep.subr.bf16.mxu0 %v668_v9 }
  0xc8   :  { %671 = vmatpush3.bf16.xpose.msra.mxu0 %v668_v9 }
 0x15f   :  { %v540_v10 = vpop.f32.mrb[0].mxu1 }
 0x160   :  { %v282_v11 = vpop.f32.mrb[1].mxu1 }
 0x161   :  { %573 = vmatprep.mubr.f32.mxu0 %v282_v11 }
 0x162   :  { %574 = vmatmul.mubr.f32.vlgmr.msra.gmra.mrb[0].mxu0 %v540_v10 }
 0x235   :  { %v575_v13 = vpop.f32.mrb[0].mxu0 }
 0x236   :  { %v672_v14 = vadd.f32 %v575_v13, %v416_v12  ;;  %v382_v15 = vpop.f32.mrb[1].mxu0 }
 0x237   :  { %v673_v16 = vadd.f32 %v416_v12, %v382_v15 }
 0x238   :  { %396 = vst [vmem:[#allocation12 + $0x8] sm:$0xff] %v672_v14 }
 0x239   :  { %395 = vst [vmem:[#allocation12] sm:$0xff] %v673_v16 }
 0x23a   :  { %782 = shalt.err (!%p779_p8)
}
 0x23b   :  { %s783_s4 = scalar_lea.hbm %s935_s5, 256 }
 0x23c   :  { %p784_p9 = scmp.ne.s32.totalorder %s935_s5, %s783_s4  ;;  %p787_p10 = scmp.lt.u32.totalorder %s783_s4, %s935_s5 }
 0x23e   :  { %p789_p11 = pnand %p787_p10, %p784_p9 }
 0x240   :  { %792 = shalt.err (!%p789_p11)
}
 0x241   :  { %408 = dma.vmem_to_hbm [thread:$0]  %s403_s18, 256, %s935_s5, [#allocation6], %s803_s30, %s803_s30, %s804_s6  }
 0x242   :  { %799 = dma.done.wait [#allocation6], 256  }
 0x243   :  { %800 = vsyncadd [#allocation6], 4294967040 }
 0x244   :  { %412 = vsyncpa [#allocation5], 1 }
 0x245   :  { %413 = vsyncpa [#allocation8], 1 }
 0x246   :  { %414 = vsyncpa [#allocation11], 1 }
 0x247   :  { %415 = vsyncpa [#allocation6], 1 }

</bundles_post_ra>
